<compile_context>
chip_gen: v5e
topology: v5e:2x2
jax: 0.10.0
libtpu: 0.0.40
codegen_flags: <defaults>
</compile_context>

<pallas_src>
import functools

import jax
import jax.numpy as jnp
from jax.experimental import pallas as pl
from jax.experimental.pallas import tpu as pltpu

_EPS = 1e-12  # torch F.normalize default eps


def _round_up(x, m):
    return ((x + m - 1) // m) * m


def _normed_linear_kernel_f32out(x_ref, w_ref, invx_ref, invw_ref, o_ref):
    """f32 output: accumulate directly into the resident output block."""
    k = pl.program_id(2)

    @pl.when(k == 0)
    def _():
        o_ref[...] = jnp.zeros_like(o_ref)

    o_ref[...] += jnp.dot(
        x_ref[...], w_ref[...], preferred_element_type=jnp.float32)

    @pl.when(k == pl.num_programs(2) - 1)
    def _():
        # (tm, tn) * (tm, 1) * (1, tn) broadcasted scale.
        o_ref[...] = o_ref[...] * invx_ref[...] * invw_ref[...]


def _normed_linear_kernel_acc(x_ref, w_ref, invx_ref, invw_ref, o_ref, acc_ref):
    """Non-f32 output: keep a float32 VMEM accumulator scratch."""
    k = pl.program_id(2)

    @pl.when(k == 0)
    def _():
        acc_ref[...] = jnp.zeros_like(acc_ref)

    acc_ref[...] += jnp.dot(
        x_ref[...], w_ref[...], preferred_element_type=jnp.float32)

    @pl.when(k == pl.num_programs(2) - 1)
    def _():
        o_ref[...] = (acc_ref[...] * invx_ref[...] * invw_ref[...]).astype(
            o_ref.dtype)


def normed_linear(x, weight, *, tm=512, tn=512, tk=512,
                  mxu_dtype=jnp.bfloat16, out_dtype=jnp.float32):
    """x: (N, in_features), weight: (in_features, out_features) -> (N, out_features)."""
    n, in_f = x.shape
    in_f2, out_f = weight.shape
    assert in_f == in_f2

    # --- inverse norms, computed ONCE in float32 in the wrapper -------------
    xf = x.astype(jnp.float32)
    wf = weight.astype(jnp.float32)
    inv_x = jax.lax.rsqrt(
        jnp.maximum(jnp.sum(xf * xf, axis=1, keepdims=True), _EPS * _EPS))  # (n, 1)
    inv_w = jax.lax.rsqrt(
        jnp.maximum(jnp.sum(wf * wf, axis=0, keepdims=True), _EPS * _EPS))  # (1, out_f)

    # --- tile selection (respect packing: bf16 needs 16-row sublane tiles) --
    operand_itemsize = jnp.dtype(mxu_dtype).itemsize
    sub = 16 if operand_itemsize < 4 else 8

    tm = min(tm, _round_up(n, sub))        # small-batch path: one row tile
    tn = min(tn, _round_up(out_f, 128))
    tk = min(tk, _round_up(in_f, 128))
    tm = _round_up(tm, sub)
    tn = _round_up(tn, 128)
    tk = _round_up(tk, 128)

    n_p = _round_up(n, tm)
    m_p = _round_up(out_f, tn)
    k_p = _round_up(in_f, tk)

    # --- pad + cast operands in the wrapper (zero pad is exact here) --------
    x_m = x.astype(mxu_dtype)
    w_m = weight.astype(mxu_dtype)
    x_p = x_m if (n_p == n and k_p == in_f) else jnp.pad(
        x_m, ((0, n_p - n), (0, k_p - in_f)))
    w_p = w_m if (k_p == in_f and m_p == out_f) else jnp.pad(
        w_m, ((0, k_p - in_f), (0, m_p - out_f)))
    invx_p = inv_x if n_p == n else jnp.pad(inv_x, ((0, n_p - n), (0, 0)))
    invw_p = inv_w if m_p == out_f else jnp.pad(inv_w, ((0, 0), (0, m_p - out_f)))

    grid = (n_p // tm, m_p // tn, k_p // tk)

    out_is_f32 = jnp.dtype(out_dtype) == jnp.dtype(jnp.float32)
    if out_is_f32:
        kernel = _normed_linear_kernel_f32out
        scratch_shapes = []
    else:
        kernel = _normed_linear_kernel_acc
        scratch_shapes = [pltpu.VMEM((tm, tn), jnp.float32)]

    # --- VMEM budget derived from the actual tile footprint -----------------
    # 2x double-buffered x/w input tiles + output tile (+acc) + small scale vecs.
    vmem_needed = (2 * (tm * tk + tk * tn) * operand_itemsize
                   + 2 * tm * tn * jnp.dtype(out_dtype).itemsize
                   + (tm * tn * 4 if not out_is_f32 else 0)
                   + 2 * (tm + tn) * 4)
    # Leave headroom; cap below 96 MiB (v5e/v6e have 128 MiB physical,
    # v7x only 64 MiB -> keep user-chosen tiles modest there).
    vmem_limit = int(min(96 * 1024 * 1024,
                         max(32 * 1024 * 1024, int(vmem_needed * 1.5))))

    # --- cost estimate (all ints; counts real re-streamed tile traffic) -----
    flops = int(2 * n_p * k_p * m_p)
    x_bytes = int(x_p.size) * operand_itemsize
    w_bytes = int(w_p.size) * operand_itemsize
    out_bytes = int(n_p * m_p) * jnp.dtype(out_dtype).itemsize
    bytes_accessed = int(x_bytes * (m_p // tn) + w_bytes * (n_p // tm)
                         + out_bytes + (invx_p.size + invw_p.size) * 4)

    out = pl.pallas_call(
        kernel,
        out_shape=jax.ShapeDtypeStruct((n_p, m_p), out_dtype),
        grid_spec=pltpu.PrefetchScalarGridSpec(
            num_scalar_prefetch=0,
            grid=grid,
            in_specs=[
                pl.BlockSpec((tm, tk), lambda i, j, k: (i, k)),
                pl.BlockSpec((tk, tn), lambda i, j, k: (k, j)),
                pl.BlockSpec((tm, 1), lambda i, j, k: (i, 0)),
                pl.BlockSpec((1, tn), lambda i, j, k: (0, j)),
            ],
            out_specs=pl.BlockSpec((tm, tn), lambda i, j, k: (i, j)),
            scratch_shapes=scratch_shapes,
        ),
        compiler_params=pltpu.CompilerParams(
            dimension_semantics=("parallel", "parallel", "arbitrary"),
            vmem_limit_bytes=vmem_limit,
        ),
        cost_estimate=pl.CostEstimate(
            flops=flops,
            transcendentals=0,
            bytes_accessed=bytes_accessed,
        ),
    )(x_p, w_p, invx_p, invw_p)

    return out[:n, :out_f]


def init_normed_linear_weight(key, in_features, out_features):
    """Deterministic re-implementation of:
         weight.uniform_(-1, 1).renorm_(2, 1, 1e-5).mul_(100000.0)
    renorm_(2, 1, maxnorm): each column is rescaled so its L2 norm is <= maxnorm
    (scale = maxnorm / (norm + 1e-7) when norm > maxnorm).
    """
    w = jax.random.uniform(
        key, (in_features, out_features), minval=-1.0, maxval=1.0,
        dtype=jnp.float32)
    maxnorm = 1e-5
    col_norm = jnp.sqrt(jnp.sum(w * w, axis=0, keepdims=True))
    scale = jnp.where(col_norm > maxnorm, maxnorm / (col_norm + 1e-7), 1.0)
    return w * scale * 100000.0


def reference_normed_linear(x, weight):
    xn = x / jnp.maximum(jnp.linalg.norm(x, axis=1, keepdims=True), _EPS)
    wn = weight / jnp.maximum(jnp.linalg.norm(weight, axis=0, keepdims=True), _EPS)
    return xn @ wn


if __name__ == "__main__":
    key = jax.random.PRNGKey(0)
    kx1, kw1, kx2, kw2 = jax.random.split(key, 4)

    # Test 1: small shape implied by the module, f32 MXU path, tight tolerance.
    N1, IN1, OUT1 = 8, 32, 128
    x1 = jax.random.normal(kx1, (N1, IN1), dtype=jnp.float32)
    w1 = init_normed_linear_weight(kw1, IN1, OUT1)
    out1 = jax.block_until_ready(normed_linear(x1, w1, mxu_dtype=jnp.float32))
    ref1 = reference_normed_linear(x1, w1)
    assert out1.shape == (N1, OUT1)
    assert jnp.allclose(out1, ref1, atol=1e-5, rtol=1e-5), "f32 path mismatch"

    # Test 2: default bf16 MXU path, full (M, N, K) grid with K accumulation
    # and padding (grid = (2, 3, 3)); bf16-level tolerance.
    N2, IN2, OUT2 = 24, 320, 384
    x2 = jax.random.normal(kx2, (N2, IN2), dtype=jnp.float32)
    w2 = init_normed_linear_weight(kw2, IN2, OUT2)
    out2 = jax.block_until_ready(
        normed_linear(x2, w2, tm=16, tn=128, tk=128))
    ref2 = reference_normed_linear(x2, w2)
    assert out2.shape == (N2, OUT2)
    assert jnp.allclose(out2, ref2, atol=2e-2, rtol=0), "bf16 path mismatch"

    print("KERNEL_OK")
</pallas_src>

<mosaic_0001>
module attributes {stable_mosaic.version = 11 : i64} {
  func.func @_normed_linear_kernel_f32out(%arg0: i32, %arg1: i32, %arg2: i32, %arg3: memref<8x128xf32, #tpu.memory_space<vmem>>, %arg4: memref<128x128xf32, #tpu.memory_space<vmem>>, %arg5: memref<8x1xf32, #tpu.memory_space<vmem>>, %arg6: memref<1x128xf32, #tpu.memory_space<vmem>>, %arg7: memref<8x128xf32, #tpu.memory_space<vmem>>) attributes {dimension_semantics = [#tpu.dimension_semantics<parallel>, #tpu.dimension_semantics<parallel>, #tpu.dimension_semantics<arbitrary>], iteration_bounds = array<i64: 1, 1, 1>, scalar_prefetch = 0 : i64, scratch_operands = 0 : i64, tpu.core_type = #tpu.core_type<tc>, window_params = [{transform_indices = @transform_0, window_bounds = array<i64: 8, 128>}, {transform_indices = @transform_1, window_bounds = array<i64: 128, 128>}, {transform_indices = @transform_2, window_bounds = array<i64: 8, 1>}, {transform_indices = @transform_3, window_bounds = array<i64: 1, 128>}, {transform_indices = @transform_4, window_bounds = array<i64: 8, 128>}]} {
    %c0_i32 = arith.constant 0 : i32
    %0 = arith.cmpi eq, %arg2, %c0_i32 : i32
    %1 = arith.extui %0 : i1 to i32
    %c0_i32_0 = arith.constant 0 : i32
    %2 = arith.cmpi ne, %1, %c0_i32_0 : i32
    scf.if %2 {
      %cst_10 = arith.constant 0.000000e+00 : f32
      %12 = vector.broadcast %cst_10 : f32 to vector<8x128xf32>
      %c0_11 = arith.constant 0 : index
      %c0_12 = arith.constant 0 : index
      %13 = vector.load %arg7[%c0_11, %c0_12] : memref<8x128xf32, #tpu.memory_space<vmem>>, vector<8x128xf32>
      tpu.vector_store %arg7[%c0_11, %c0_12], %12 {strides = array<i32>} : memref<8x128xf32, #tpu.memory_space<vmem>>, vector<8x128xf32>,
    } else {
    }
    %c0 = arith.constant 0 : index
    %c0_1 = arith.constant 0 : index
    %3 = vector.load %arg7[%c0, %c0_1] : memref<8x128xf32, #tpu.memory_space<vmem>>, vector<8x128xf32>
    %c0_2 = arith.constant 0 : index
    %c0_3 = arith.constant 0 : index
    %4 = vector.load %arg3[%c0_2, %c0_3] : memref<8x128xf32, #tpu.memory_space<vmem>>, vector<8x128xf32>
    %c0_4 = arith.constant 0 : index
    %c0_5 = arith.constant 0 : index
    %5 = vector.load %arg4[%c0_4, %c0_5] : memref<128x128xf32, #tpu.memory_space<vmem>>, vector<128x128xf32>
    %cst = arith.constant dense<0.000000e+00> : vector<8x128xf32>
    %6 = tpu.matmul %4, %5, %cst {dimension_numbers = #tpu.dot_dimension_numbers<[1], [0], [0], [1], [0, 0, 1, 1], [], []>} : vector<8x128xf32>, vector<128x128xf32>, vector<8x128xf32> -> vector<8x128xf32>
    %7 = arith.addf %3, %6 : vector<8x128xf32>
    %c0_6 = arith.constant 0 : index
    %c0_7 = arith.constant 0 : index
    %8 = vector.load %arg7[%c0_6, %c0_7] : memref<8x128xf32, #tpu.memory_space<vmem>>, vector<8x128xf32>
    tpu.vector_store %arg7[%c0_6, %c0_7], %7 {strides = array<i32>} : memref<8x128xf32, #tpu.memory_space<vmem>>, vector<8x128xf32>,
    %c0_i32_8 = arith.constant 0 : i32
    %9 = arith.cmpi eq, %arg2, %c0_i32_8 : i32
    %10 = arith.extui %9 : i1 to i32
    %c0_i32_9 = arith.constant 0 : i32
    %11 = arith.cmpi ne, %10, %c0_i32_9 : i32
    scf.if %11 {
      %c0_10 = arith.constant 0 : index
      %c0_11 = arith.constant 0 : index
      %12 = vector.load %arg7[%c0_10, %c0_11] : memref<8x128xf32, #tpu.memory_space<vmem>>, vector<8x128xf32>
      %c0_12 = arith.constant 0 : index
      %c0_13 = arith.constant 0 : index
      %13 = vector.load %arg5[%c0_12, %c0_13] : memref<8x1xf32, #tpu.memory_space<vmem>>, vector<8x1xf32>
      %14 = vector.broadcast %13 : vector<8x1xf32> to vector<8x128xf32>
      %15 = arith.mulf %12, %14 : vector<8x128xf32>
      %c0_14 = arith.constant 0 : index
      %c0_15 = arith.constant 0 : index
      %16 = vector.load %arg6[%c0_14, %c0_15] : memref<1x128xf32, #tpu.memory_space<vmem>>, vector<1x128xf32>
      %17 = vector.broadcast %16 : vector<1x128xf32> to vector<8x128xf32>
      %18 = arith.mulf %15, %17 : vector<8x128xf32>
      %c0_16 = arith.constant 0 : index
      %c0_17 = arith.constant 0 : index
      %19 = vector.load %arg7[%c0_16, %c0_17] : memref<8x128xf32, #tpu.memory_space<vmem>>, vector<8x128xf32>
      tpu.vector_store %arg7[%c0_16, %c0_17], %18 {strides = array<i32>} : memref<8x128xf32, #tpu.memory_space<vmem>>, vector<8x128xf32>,
    } else {
    }
    return
  }
  func.func @transform_0(%arg0: i32, %arg1: i32, %arg2: i32) -> (i32, i32) {
    %c0_i32 = arith.constant 0 : i32
    return %arg0, %arg2 : i32, i32
  }
  func.func @transform_1(%arg0: i32, %arg1: i32, %arg2: i32) -> (i32, i32) {
    %c0_i32 = arith.constant 0 : i32
    return %arg2, %arg1 : i32, i32
  }
  func.func @transform_2(%arg0: i32, %arg1: i32, %arg2: i32) -> (i32, i32) {
    %c0_i32 = arith.constant 0 : i32
    %c0_i32_0 = arith.constant 0 : i32
    return %arg0, %c0_i32 : i32, i32
  }
  func.func @transform_3(%arg0: i32, %arg1: i32, %arg2: i32) -> (i32, i32) {
    %c0_i32 = arith.constant 0 : i32
    %c0_i32_0 = arith.constant 0 : i32
    return %c0_i32, %arg1 : i32, i32
  }
  func.func @transform_4(%arg0: i32, %arg1: i32, %arg2: i32) -> (i32, i32) {
    %c0_i32 = arith.constant 0 : i32
    return %arg0, %arg1 : i32, i32
  }
}

</mosaic_0001>

<bundles_post_ra>
// kernel: tpu_custom_call.1
= control target key start
LH: loop header
LB: loop body
LE: loop exit
PB: predicated region body
PF: predicated region fallthrough
CT: control target
= control target key end

     0   :  { %9 = vsyncpa [#allocation3], 0  ;;  %s218_s0 = inlined_call_operand.vmem [shape: f32[8,128], index: 0, kind: input, shape index: {}]   ;;  %s219_s1 = inlined_call_operand.hbm [shape: f32[128,128], index: 1, kind: input, shape index: {}]   ;;  %s220_s2 = inlined_call_operand.vmem [shape: f32[8,1], index: 2, kind: input, shape index: {}]   ;;  %s221_s3 = inlined_call_operand.vmem [shape: f32[1,128], index: 3, kind: input, shape index: {}]   ;;  %s222_s4 = inlined_call_operand.hbm [shape: f32[8,128], index: 4, kind: output, shape index: {}]  }
   0x1   :  { %10 = vsyncpa [#allocation4], 0  ;;  %s17_s17 = sshll.u32 %s219_s1, 4  ;;  %s173_s18 = smov [#allocation2]   ;;  %s18_s17 = int_to_ptr.hbm [resolvable:$true] %s17_s17 }
   0x2   :  { %s19_s19 = sshll.u32 %s173_s18, 4  ;;  %s174_s20 = smov 128   ;;  %s20_s19 = int_to_ptr.vmem [resolvable:$true] %s19_s19 }
   0x3   :  { %s175_s21 = smov 8  }
   0x4   :  { %25 = dma.hbm_to_vmem [thread:$0]  %s18_s17, 2048, %s20_s19, [#allocation3], %s174_s20, %s174_s20, %s175_s21  }
   0x5   :  { %169 = dma.done.wait [#allocation3], 2048  }
   0x6   :  { %170 = vsyncadd [#allocation3], 4294965248  ;;  %v56_v0 = vld [vmem:[#allocation2 + $0x78] sm:$0xff]  ;;  %v55_v1 = vld [vmem:[#allocation2 + $0x70] sm:$0xff]  ;;  %v176_v2 = vmov 0   ;;  %s177_s26 = smov [#allocation5]  }
   0x7   :  { %57 = vmatpush.msra.mxu0 %v56_v0  ;;  %119 = vset.pattern.permute.xlu0 %v176_v2  ;;  %v54_v3 = vld [vmem:[#allocation2 + $0x68] sm:$0xff]  ;;  %v53_v4 = vld [vmem:[#allocation2 + $0x60] sm:$0xff]  ;;  %v52_v6 = vld [vmem:[#allocation2 + $0x58] sm:$0xff]  ;;  %s101_s27 = sshll.u32 %s177_s26, 4  ;;  %s103_s30 = sshll.u32 %s222_s4, 4  ;;  %s102_s27 = int_to_ptr.vmem [resolvable:$true] %s101_s27  ;;  %s104_s30 = int_to_ptr.hbm [resolvable:$true] %s103_s30 }
   0x8   :  { %v83_v5 = vld [vmem:[%s220_s2] sm:$0xff]  ;;  %v51_v7 = vld [vmem:[#allocation2 + $0x50] sm:$0xff]  ;;  %v50_v8 = vld [vmem:[#allocation2 + $0x48] sm:$0xff] }
   0x9   :  { %58 = vmatpush.msra.mxu0 %v55_v1  ;;  %86 = vperm.xlu0 %119, %v83_v5   ;;  %v49_v9 = vld [vmem:[#allocation2 + $0x40] sm:$0xff]  ;;  %v48_v10 = vld [vmem:[#allocation2 + $0x38] sm:$0xff]  ;;  %v47_v11 = vld [vmem:[#allocation2 + $0x30] sm:$0xff] }
   0xa   :  { %v46_v12 = vld [vmem:[#allocation2 + $0x28] sm:$0xff]  ;;  %v45_v13 = vld [vmem:[#allocation2 + $0x20] sm:$0xff]  ;;  %v44_v14 = vld [vmem:[#allocation2 + $0x18] sm:$0xff] }
   0xb   :  { %59 = vmatpush.msra.mxu0 %v54_v3  ;;  %v43_v15 = vld [vmem:[#allocation2 + $0x10] sm:$0xff]  ;;  %v42_v16 = vld [vmem:[#allocation2 + $0x8] sm:$0xff]  ;;  %v41_v17 = vld [vmem:[#allocation2] sm:$0xff] }
   0xc   :  { %v40_v18 = vld [vmem:[%s218_s0] sm:$0xff] }
   0xd   :  { %60 = vmatpush.msra.mxu0 %v53_v4  ;;  %v120_v21 = vld [vmem:[%s221_s3] ss:$0 sm:$0xff] }
   0xf   :  { %61 = vmatpush.msra.mxu0 %v52_v6 }
  0x11   :  { %62 = vmatpush.msra.mxu0 %v51_v7 }
  0x13   :  { %63 = vmatpush.msra.mxu0 %v50_v8 }
  0x15   :  { %64 = vmatpush.msra.mxu0 %v49_v9 }
  0x17   :  { %65 = vmatpush.msra.mxu0 %v48_v10 }
  0x19   :  { %66 = vmatpush.msra.mxu0 %v47_v11 }
  0x1b   :  { %67 = vmatpush.msra.mxu0 %v46_v12 }
  0x1d   :  { %68 = vmatpush.msra.mxu0 %v45_v13 }
  0x1f   :  { %69 = vmatpush.msra.mxu0 %v44_v14 }
  0x21   :  { %70 = vmatpush.msra.mxu0 %v43_v15 }
  0x23   :  { %71 = vmatpush.msra.mxu0 %v42_v16 }
  0x25   :  { %72 = vmatpush.msra.mxu0 %v41_v17 }
  0x26   :  { %73 = vmatmul.f32.vlgmr.msra.gmra.mxu0 %v40_v18 }
  0x7b   :  { %v87_v20 = vpop.permute.xlu0 %86 }
  0xa3   :  { %v74_v19 = vpop.f32.mrf.mxu0 }
  0xa4   :  { %v89_v22 = vmul.f32 %v87_v20, %v74_v19 }
  0xa6   :  { %v94_v23 = vmul.f32 %v120_v21, %v89_v22 }
  0xa8   :  { %95 = vst [vmem:[#allocation5] sm:$0xff] %v94_v23 }
  0xa9   :  { %106 = dma.vmem_to_hbm [thread:$0]  %s102_s27, 128, %s104_s30, [#allocation4]  }
  0xaa   :  { %171 = dma.done.wait [#allocation4], 128  }
  0xab   :  { %172 = vsyncadd [#allocation4], 4294967168 }
  0xac   :  { %111 = vsyncpa [#allocation3], 1 }
  0xad   :  { %112 = vsyncpa [#allocation4], 1 }

</bundles_post_ra>
